<compile_context>
chip_gen: v7x
topology: tpu7x:2x2x1
jax: 0.10.0
libtpu: 0.0.40
codegen_flags: <defaults>
</compile_context>

<pallas_src>
import math
from functools import partial

import jax
import jax.numpy as jnp
import numpy as np
from jax.experimental import pallas as pl
from jax.experimental.pallas import tpu as pltpu


def _layer_norm(x, gamma, beta, eps):
    mu = jnp.mean(x, axis=-1, keepdims=True)
    xc = x - mu
    var = jnp.mean(xc * xc, axis=-1, keepdims=True)
    inv = jax.lax.rsqrt(var + eps)
    return xc * inv * gamma + beta


def _gelu_tanh(x):
    # tanh approximation of GELU (see TODO above).
    c = math.sqrt(2.0 / math.pi)
    return 0.5 * x * (1.0 + jnp.tanh(c * (x + 0.044715 * x * x * x)))


# --------------------------------------------------------------------------
# Kernel 1: self-attention + output dense + residual + LayerNorm1
# --------------------------------------------------------------------------
def _attn_ln_kernel(x_ref, bias_ref,
                    wqkv_ref, bqkv_ref, wo_ref, bo_ref, g1_ref, b1_ref,
                    y_ref,
                    acc_ref, xc_ref, ctx_ref,
                    *, group_size, num_groups, head_dim, eps, compute_dtype):
    f32 = jnp.float32
    cd = compute_dtype
    approx = jnp.dtype(cd) != jnp.dtype(jnp.float32)
    dh = head_dim
    g = pl.program_id(1)

    # Once per batch step: cast activations to the MXU compute dtype and zero
    # the attention-output accumulator.
    @pl.when(g == 0)
    def _():
        xc_ref[...] = x_ref[0].astype(cd)
        acc_ref[...] = jnp.zeros_like(acc_ref)

    xc = xc_ref[...]                                     # (S, H) compute dtype

    # Fused Q/K/V projection for all G heads of this group (one MXU matmul):
    # the 1/sqrt(dh) scale is already folded into the Q columns + bias.
    qkv = jnp.dot(xc, wqkv_ref[0], preferred_element_type=f32) + bqkv_ref[0]

    bias = bias_ref[0]                                   # (1, S_k) mask bias

    for j in range(group_size):                          # short unrolled loop
        base = 3 * dh * j
        q = qkv[:, base:base + dh]
        k = qkv[:, base + dh:base + 2 * dh]
        v = qkv[:, base + 2 * dh:base + 3 * dh]

        s = jax.lax.dot_general(q.astype(cd), k.astype(cd),
                                (((1,), (1,)), ((), ())),
                                preferred_element_type=f32)      # (S, S)
        s = s + bias
        s = s - jnp.max(s, axis=-1, keepdims=True)
        p = jnp.exp(s)
        ctx = jnp.dot(p.astype(cd), v.astype(cd),
                      preferred_element_type=f32)                # (S, dh)
        # Deferred softmax normalization: scale the (S, dh) context instead
        # of the (S, S) probability matrix.
        ctx = ctx * pl.reciprocal(jnp.sum(p, axis=-1, keepdims=True),
                                  approx=approx)
        col = j * dh
        ctx_ref[:, col:col + dh] = ctx.astype(cd)

    # ONE output-dense matmul for the whole group: (S, G*dh) @ (G*dh, H).
    acc_ref[...] += jnp.dot(ctx_ref[...], wo_ref[0],
                            preferred_element_type=f32)

    # Epilogue at the last head group: bias + residual + LayerNorm1, single
    # lane-dense (S, H) store.
    @pl.when(g == num_groups - 1)
    def _():
        attn = acc_ref[...] + bo_ref[...]
        y = _layer_norm(attn + x_ref[0].astype(f32),
                        g1_ref[...], b1_ref[...], eps)
        y_ref[0] = y.astype(y_ref.dtype)


# --------------------------------------------------------------------------
# Kernel 2: intermediate dense + GELU + output dense + residual + LayerNorm2
# --------------------------------------------------------------------------
def _ffn_ln_kernel(y_ref, wi_ref, bi_ref, wf_ref, bf_ref, g2_ref, b2_ref,
                   out_ref, acc_ref,
                   *, num_i_tiles, eps, compute_dtype):
    f32 = jnp.float32
    cd = compute_dtype
    i = pl.program_id(1)

    @pl.when(i == 0)
    def _():
        acc_ref[...] = jnp.zeros_like(acc_ref)

    y = y_ref[...]                                       # (TR, H) float32
    ff = jnp.dot(y.astype(cd), wi_ref[...],
                 preferred_element_type=f32) + bi_ref[...]
    ff = _gelu_tanh(ff)
    acc_ref[...] += jnp.dot(ff.astype(cd), wf_ref[...],
                            preferred_element_type=f32)

    @pl.when(i == num_i_tiles - 1)
    def _():
        o = acc_ref[...] + bf_ref[...] + y
        out_ref[...] = _layer_norm(o, g2_ref[...], b2_ref[...],
                                   eps).astype(out_ref.dtype)


# --------------------------------------------------------------------------
# Host wrapper
# --------------------------------------------------------------------------
def _head_group(num_heads, target):
    g = max(1, min(target, num_heads))
    while num_heads % g:
        g -= 1
    return g


def _largest_divisor(total, target, align):
    t = min(target, total)
    for cand in range(t, 0, -1):
        if total % cand == 0 and cand % align == 0:
            return cand
    return total               # fall back to a single full-extent block


def roberta_layer(hidden_states, attention_mask, params, *, num_heads,
                  eps=1e-5, compute_dtype=jnp.bfloat16, head_group_size=4,
                  row_tile=256, inter_tile=512,
                  vmem_limit_bytes=48 * 1024 * 1024):
    """Full RobertaLayer forward.  params =
    (wq, bq, wk, bk, wv, bv, wo, bo, ln1_g, ln1_b, wi, bi, wf, bf, ln2_g, ln2_b)
    with nn.Linear weights in PyTorch (out, in) layout.
    head_group_size: 4 on v6e/v7x, 2 on v5e.  vmem_limit_bytes: sweep higher
    (64-96 MiB) on v5e/v6e for large configs; keep <=48 MiB on v7x."""
    B, S, H = hidden_states.shape
    assert H % num_heads == 0
    dh = H // num_heads
    (wq, bq, wk, bk, wv, bv, wo, bo,
     ln1_g, ln1_b, wi, bi, wf, bf, ln2_g, ln2_b) = params
    I = wi.shape[0]
    cd = compute_dtype
    f32 = jnp.float32
    out_dtype = hidden_states.dtype

    G = _head_group(num_heads, head_group_size)
    num_groups = num_heads // G

    # ---- host-side packing (free): transpose, split/group heads, cast -----
    scale = 1.0 / math.sqrt(dh)

    def split_heads(w):                      # (H_out, H_in) -> (nh, H_in, dh)
        return jnp.transpose(w.T.reshape(H, num_heads, dh), (1, 0, 2))

    wqkv = jnp.concatenate([split_heads(wq) * scale,   # fold 1/sqrt(dh) into Q
                            split_heads(wk),
                            split_heads(wv)], axis=-1)          # (nh, H, 3dh)
    wqkv = (wqkv.reshape(num_groups, G, H, 3 * dh)
                .transpose(0, 2, 1, 3)
                .reshape(num_groups, H, G * 3 * dh).astype(cd))

    bqkv = jnp.concatenate([bq.reshape(num_heads, dh) * scale,
                            bk.reshape(num_heads, dh),
                            bv.reshape(num_heads, dh)], axis=-1)
    bqkv = bqkv.reshape(num_groups, 1, G * 3 * dh).astype(f32)

    wog = wo.T.reshape(num_groups, G * dh, H).astype(cd)        # per group
    wiT = wi.T.astype(cd)                                       # (H, I)
    wfT = wf.T.astype(cd)                                       # (I, H)

    row = lambda a: a.reshape(1, -1).astype(f32)
    bo2, bi2, bf2 = row(bo), row(bi), row(bf)
    g1r, b1r, g2r, b2r = row(ln1_g), row(ln1_b), row(ln2_g), row(ln2_b)

    # Additive mask bias precomputed once on the host.
    mask_bias = (-1000.0 * (1.0 - attention_mask.astype(f32))).reshape(B, 1, S)

    cparams = pltpu.CompilerParams(
        dimension_semantics=("parallel", "arbitrary"),
        vmem_limit_bytes=vmem_limit_bytes)

    # ---------------- kernel 1: attention + residual + LayerNorm1 ----------
    const2d = lambda a: pl.BlockSpec(a.shape, lambda b, g: (0, 0))
    grp3d = lambda a: pl.BlockSpec((1,) + a.shape[1:], lambda b, g: (g, 0, 0))

    attn_call = pl.pallas_call(
        partial(_attn_ln_kernel, group_size=G, num_groups=num_groups,
                head_dim=dh, eps=eps, compute_dtype=cd),
        out_shape=jax.ShapeDtypeStruct((B, S, H), f32),
        grid_spec=pltpu.PrefetchScalarGridSpec(
            num_scalar_prefetch=0,
            grid=(B, num_groups),
            in_specs=[
                pl.BlockSpec((1, S, H), lambda b, g: (b, 0, 0)),   # hidden
                pl.BlockSpec((1, 1, S), lambda b, g: (b, 0, 0)),   # mask bias
                grp3d(wqkv), grp3d(bqkv), grp3d(wog),
                const2d(bo2), const2d(g1r), const2d(b1r),
            ],
            out_specs=pl.BlockSpec((1, S, H), lambda b, g: (b, 0, 0)),
            scratch_shapes=[pltpu.VMEM((S, H), f32),       # attn-out accum
                            pltpu.VMEM((S, H), cd),        # x cast once
                            pltpu.VMEM((S, G * dh), cd)]), # per-group context
        compiler_params=cparams,
    )
    y = attn_call(hidden_states, mask_bias, wqkv, bqkv, wog, bo2, g1r, b1r)

    # ---- kernel 2: FFN (tiled over rows x I) + residual + LayerNorm2 ------
    rows = B * S
    TR = _largest_divisor(rows, row_tile, 8)
    TI = _largest_divisor(I, inter_tile, 128)
    num_i_tiles = I // TI

    y2 = y.reshape(rows, H)
    cst2 = lambda a: pl.BlockSpec(a.shape, lambda r, i: (0, 0))

    ffn_call = pl.pallas_call(
        partial(_ffn_ln_kernel, num_i_tiles=num_i_tiles, eps=eps,
                compute_dtype=cd),
        out_shape=jax.ShapeDtypeStruct((rows, H), out_dtype),
        grid_spec=pltpu.PrefetchScalarGridSpec(
            num_scalar_prefetch=0,
            grid=(rows // TR, num_i_tiles),
            in_specs=[
                pl.BlockSpec((TR, H), lambda r, i: (r, 0)),        # y rows
                pl.BlockSpec((H, TI), lambda r, i: (0, i)),        # Wi tile
                pl.BlockSpec((1, TI), lambda r, i: (0, i)),        # bi tile
                pl.BlockSpec((TI, H), lambda r, i: (i, 0)),        # Wf tile
                cst2(bf2), cst2(g2r), cst2(b2r),
            ],
            out_specs=pl.BlockSpec((TR, H), lambda r, i: (r, 0)),
            scratch_shapes=[pltpu.VMEM((TR, H), f32)]),
        compiler_params=cparams,
    )
    out = ffn_call(y2, wiT, bi2, wfT, bf2, g2r, b2r)
    return out.reshape(B, S, H)


# --------------------------------------------------------------------------
# Plain-JAX reference (mirrors the PyTorch RobertaLayer forward, dropout = 0)
# --------------------------------------------------------------------------
def _reference(hidden, mask, params, *, num_heads, eps, compute_dtype):
    B, S, H = hidden.shape
    dh = H // num_heads
    (wq, bq, wk, bk, wv, bv, wo, bo,
     g1, b1, wi, bi, wf, bf, g2, b2) = params
    cd = compute_dtype
    f32 = jnp.float32

    def dense(x, w, b):                    # torch Linear: x @ w.T + b
        return jnp.einsum('...i,oi->...o', x.astype(cd), w.astype(cd),
                          preferred_element_type=f32) + b

    def heads(x):
        return x.reshape(B, S, num_heads, dh).transpose(0, 2, 1, 3)

    q, k, v = heads(dense(hidden, wq, bq)), heads(dense(hidden, wk, bk)), \
        heads(dense(hidden, wv, bv))
    bias = -1000.0 * (1.0 - mask[:, None, None, :])
    s = jnp.einsum('bhqd,bhkd->bhqk', q.astype(cd), k.astype(cd),
                   preferred_element_type=f32) / math.sqrt(dh) + bias
    p = jax.nn.softmax(s, axis=-1)
    ctx = jnp.einsum('bhqk,bhkd->bhqd', p.astype(cd), v.astype(cd),
                     preferred_element_type=f32)
    ctx = ctx.transpose(0, 2, 1, 3).reshape(B, S, H)

    attn = dense(ctx, wo, bo)
    y = _layer_norm(attn + hidden, g1, b1, eps)
    ff = _gelu_tanh(dense(y, wi, bi))
    out = dense(ff, wf, bf)
    return _layer_norm(out + y, g2, b2, eps)


if __name__ == "__main__":
    B, S, H, num_heads = 2, 8, 32, 4
    I = 4 * H
    eps = 1e-5

    keys = jax.random.split(jax.random.PRNGKey(0), 20)
    hidden = jax.random.normal(keys[0], (B, S, H), dtype=jnp.float32)
    mask = jnp.ones((B, S), jnp.float32).at[1, 6:].set(0.0)

    def linear_init(kw, kb, out_dim, in_dim):
        s = 1.0 / math.sqrt(in_dim)
        w = jax.random.uniform(kw, (out_dim, in_dim), minval=-s, maxval=s,
                               dtype=jnp.float32)
        b = jax.random.uniform(kb, (out_dim,), minval=-s, maxval=s,
                               dtype=jnp.float32)
        return w, b

    wq, bq = linear_init(keys[1], keys[2], H, H)
    wk, bk = linear_init(keys[3], keys[4], H, H)
    wv, bv = linear_init(keys[5], keys[6], H, H)
    wo, bo = linear_init(keys[7], keys[8], H, H)
    wi, bi = linear_init(keys[9], keys[10], I, H)
    wf, bf = linear_init(keys[11], keys[12], H, I)
    g1 = 1.0 + 0.1 * jax.random.normal(keys[13], (H,), jnp.float32)
    b1 = 0.1 * jax.random.normal(keys[14], (H,), jnp.float32)
    g2 = 1.0 + 0.1 * jax.random.normal(keys[15], (H,), jnp.float32)
    b2 = 0.1 * jax.random.normal(keys[16], (H,), jnp.float32)
    params = (wq, bq, wk, bk, wv, bv, wo, bo, g1, b1, wi, bi, wf, bf, g2, b2)

    # 1) exact float32 path -- tight check against the plain-JAX reference
    out_f32 = jax.block_until_ready(
        roberta_layer(hidden, mask, params, num_heads=num_heads,
                      eps=eps, compute_dtype=jnp.float32))
    ref_f32 = _reference(hidden, mask, params, num_heads=num_heads,
                         eps=eps, compute_dtype=jnp.float32)
    np.testing.assert_allclose(np.asarray(out_f32), np.asarray(ref_f32),
                               rtol=5e-4, atol=5e-4)

    # 2) bf16 MXU path (production default) -- check vs bf16-cast reference
    out_bf16 = jax.block_until_ready(
        roberta_layer(hidden, mask, params, num_heads=num_heads,
                      eps=eps, compute_dtype=jnp.bfloat16))
    ref_bf16 = _reference(hidden, mask, params, num_heads=num_heads,
                          eps=eps, compute_dtype=jnp.bfloat16)
    np.testing.assert_allclose(np.asarray(out_bf16), np.asarray(ref_bf16),
                               rtol=2e-2, atol=2e-2)

    print("KERNEL_OK")
</pallas_src>

<mosaic_0001>
module attributes {stable_mosaic.version = 11 : i64} {
  func.func @_attn_ln_kernel(%arg0: i32, %arg1: i32, %arg2: memref<1x8x32xf32, #tpu.memory_space<vmem>>, %arg3: memref<1x1x8xf32, #tpu.memory_space<vmem>>, %arg4: memref<1x32x96xf32, #tpu.memory_space<vmem>>, %arg5: memref<1x1x96xf32, #tpu.memory_space<vmem>>, %arg6: memref<1x32x32xf32, #tpu.memory_space<vmem>>, %arg7: memref<1x32xf32, #tpu.memory_space<vmem>>, %arg8: memref<1x32xf32, #tpu.memory_space<vmem>>, %arg9: memref<1x32xf32, #tpu.memory_space<vmem>>, %arg10: memref<1x8x32xf32, #tpu.memory_space<vmem>>, %arg11: memref<8x32xf32, #tpu.memory_space<vmem>>, %arg12: memref<8x32xf32, #tpu.memory_space<vmem>>, %arg13: memref<8x32xf32, #tpu.memory_space<vmem>>) attributes {dimension_semantics = [#tpu.dimension_semantics<parallel>, #tpu.dimension_semantics<arbitrary>], iteration_bounds = array<i64: 2, 1>, scalar_prefetch = 0 : i64, scratch_operands = 3 : i64, tpu.core_type = #tpu.core_type<tc>, window_params = [{transform_indices = @transform_0, window_bounds = array<i64: 1, 8, 32>}, {transform_indices = @transform_1, window_bounds = array<i64: 1, 1, 8>}, {transform_indices = @transform_2, window_bounds = array<i64: 1, 32, 96>}, {transform_indices = @transform_3, window_bounds = array<i64: 1, 1, 96>}, {transform_indices = @transform_4, window_bounds = array<i64: 1, 32, 32>}, {pipeline_mode = #tpu.pipeline_mode<synchronous>, transform_indices = @transform_5, window_bounds = array<i64: 1, 32>}, {pipeline_mode = #tpu.pipeline_mode<synchronous>, transform_indices = @transform_6, window_bounds = array<i64: 1, 32>}, {pipeline_mode = #tpu.pipeline_mode<synchronous>, transform_indices = @transform_7, window_bounds = array<i64: 1, 32>}, {transform_indices = @transform_8, window_bounds = array<i64: 1, 8, 32>}]} {
    %c0_i32 = arith.constant 0 : i32
    %0 = arith.cmpi eq, %arg1, %c0_i32 : i32
    %1 = arith.extui %0 : i1 to i32
    %c0_i32_0 = arith.constant 0 : i32
    %2 = arith.cmpi ne, %1, %c0_i32_0 : i32
    scf.if %2 {
      %c0_44 = arith.constant 0 : index
      %c0_45 = arith.constant 0 : index
      %c0_46 = arith.constant 0 : index
      %95 = vector.load %arg2[%c0_44, %c0_45, %c0_46] : memref<1x8x32xf32, #tpu.memory_space<vmem>>, vector<1x8x32xf32>
      %96 = vector.shape_cast %95 : vector<1x8x32xf32> to vector<8x32xf32>
      %c0_47 = arith.constant 0 : index
      %c0_48 = arith.constant 0 : index
      %97 = vector.load %arg12[%c0_47, %c0_48] : memref<8x32xf32, #tpu.memory_space<vmem>>, vector<8x32xf32>
      tpu.vector_store %arg12[%c0_47, %c0_48], %96 {strides = array<i32>} : memref<8x32xf32, #tpu.memory_space<vmem>>, vector<8x32xf32>,
      %cst_49 = arith.constant 0.000000e+00 : f32
      %98 = vector.broadcast %cst_49 : f32 to vector<8x32xf32>
      %c0_50 = arith.constant 0 : index
      %c0_51 = arith.constant 0 : index
      %99 = vector.load %arg11[%c0_50, %c0_51] : memref<8x32xf32, #tpu.memory_space<vmem>>, vector<8x32xf32>
      tpu.vector_store %arg11[%c0_50, %c0_51], %98 {strides = array<i32>} : memref<8x32xf32, #tpu.memory_space<vmem>>, vector<8x32xf32>,
    } else {
    }
    %c0 = arith.constant 0 : index
    %c0_1 = arith.constant 0 : index
    %3 = vector.load %arg12[%c0, %c0_1] : memref<8x32xf32, #tpu.memory_space<vmem>>, vector<8x32xf32>
    %c0_2 = arith.constant 0 : index
    %c0_3 = arith.constant 0 : index
    %c0_4 = arith.constant 0 : index
    %4 = vector.load %arg4[%c0_2, %c0_3, %c0_4] : memref<1x32x96xf32, #tpu.memory_space<vmem>>, vector<1x32x96xf32>
    %5 = vector.shape_cast %4 : vector<1x32x96xf32> to vector<32x96xf32>
    %cst = arith.constant dense<0.000000e+00> : vector<8x96xf32>
    %6 = tpu.matmul %3, %5, %cst {dimension_numbers = #tpu.dot_dimension_numbers<[1], [0], [0], [1], [0, 0, 1, 1], [], []>} : vector<8x32xf32>, vector<32x96xf32>, vector<8x96xf32> -> vector<8x96xf32>
    %c0_5 = arith.constant 0 : index
    %c0_6 = arith.constant 0 : index
    %c0_7 = arith.constant 0 : index
    %7 = vector.load %arg5[%c0_5, %c0_6, %c0_7] : memref<1x1x96xf32, #tpu.memory_space<vmem>>, vector<1x1x96xf32>
    %8 = vector.shape_cast %7 : vector<1x1x96xf32> to vector<1x96xf32>
    %9 = vector.broadcast %8 : vector<1x96xf32> to vector<8x96xf32>
    %10 = arith.addf %6, %9 : vector<8x96xf32>
    %c0_8 = arith.constant 0 : index
    %c0_9 = arith.constant 0 : index
    %c0_10 = arith.constant 0 : index
    %11 = vector.load %arg3[%c0_8, %c0_9, %c0_10] : memref<1x1x8xf32, #tpu.memory_space<vmem>>, vector<1x1x8xf32>
    %12 = vector.shape_cast %11 : vector<1x1x8xf32> to vector<1x8xf32>
    %13 = vector.extract_strided_slice %10 {offsets = [0, 0], sizes = [8, 8], strides = [1, 1]} : vector<8x96xf32> to vector<8x8xf32>
    %14 = vector.extract_strided_slice %10 {offsets = [0, 8], sizes = [8, 8], strides = [1, 1]} : vector<8x96xf32> to vector<8x8xf32>
    %15 = vector.extract_strided_slice %10 {offsets = [0, 16], sizes = [8, 8], strides = [1, 1]} : vector<8x96xf32> to vector<8x8xf32>
    %cst_11 = arith.constant dense<0.000000e+00> : vector<8x8xf32>
    %16 = tpu.matmul %13, %14, %cst_11 {dimension_numbers = #tpu.dot_dimension_numbers<[1], [1], [0], [0], [0, 0, 1, 0], [], []>} : vector<8x8xf32>, vector<8x8xf32>, vector<8x8xf32> -> vector<8x8xf32>
    %17 = vector.broadcast %12 : vector<1x8xf32> to vector<8x8xf32>
    %18 = arith.addf %16, %17 : vector<8x8xf32>
    %cst_12 = arith.constant dense<0xFF800000> : vector<8xf32>
    %19 = vector.multi_reduction <maximumf>, %18, %cst_12 [1] : vector<8x8xf32> to vector<8xf32>
    %20 = vector.shape_cast %19 : vector<8xf32> to vector<8x1xf32>
    %21 = vector.broadcast %20 : vector<8x1xf32> to vector<8x8xf32>
    %22 = arith.subf %18, %21 : vector<8x8xf32>
    %23 = math.exp %22 : vector<8x8xf32>
    %cst_13 = arith.constant dense<0.000000e+00> : vector<8x8xf32>
    %24 = tpu.matmul %23, %15, %cst_13 {dimension_numbers = #tpu.dot_dimension_numbers<[1], [0], [0], [1], [0, 0, 1, 1], [], []>} : vector<8x8xf32>, vector<8x8xf32>, vector<8x8xf32> -> vector<8x8xf32>
    %cst_14 = arith.constant dense<0.000000e+00> : vector<8xf32>
    %25 = vector.multi_reduction <add>, %23, %cst_14 [1] : vector<8x8xf32> to vector<8xf32>
    %26 = vector.shape_cast %25 : vector<8xf32> to vector<8x1xf32>
    %27 = tpu.reciprocal %26 : vector<8x1xf32> -> vector<8x1xf32>
    %28 = vector.broadcast %27 : vector<8x1xf32> to vector<8x8xf32>
    %29 = arith.mulf %24, %28 : vector<8x8xf32>
    %c0_15 = arith.constant 0 : index
    %c0_16 = arith.constant 0 : index
    %30 = vector.load %arg13[%c0_15, %c0_16] : memref<8x32xf32, #tpu.memory_space<vmem>>, vector<8x8xf32>
    tpu.vector_store %arg13[%c0_15, %c0_16], %29 {strides = array<i32>} : memref<8x32xf32, #tpu.memory_space<vmem>>, vector<8x8xf32>,
    %31 = vector.extract_strided_slice %10 {offsets = [0, 24], sizes = [8, 8], strides = [1, 1]} : vector<8x96xf32> to vector<8x8xf32>
    %32 = vector.extract_strided_slice %10 {offsets = [0, 32], sizes = [8, 8], strides = [1, 1]} : vector<8x96xf32> to vector<8x8xf32>
    %33 = vector.extract_strided_slice %10 {offsets = [0, 40], sizes = [8, 8], strides = [1, 1]} : vector<8x96xf32> to vector<8x8xf32>
    %cst_17 = arith.constant dense<0.000000e+00> : vector<8x8xf32>
    %34 = tpu.matmul %31, %32, %cst_17 {dimension_numbers = #tpu.dot_dimension_numbers<[1], [1], [0], [0], [0, 0, 1, 0], [], []>} : vector<8x8xf32>, vector<8x8xf32>, vector<8x8xf32> -> vector<8x8xf32>
    %35 = vector.broadcast %12 : vector<1x8xf32> to vector<8x8xf32>
    %36 = arith.addf %34, %35 : vector<8x8xf32>
    %cst_18 = arith.constant dense<0xFF800000> : vector<8xf32>
    %37 = vector.multi_reduction <maximumf>, %36, %cst_18 [1] : vector<8x8xf32> to vector<8xf32>
    %38 = vector.shape_cast %37 : vector<8xf32> to vector<8x1xf32>
    %39 = vector.broadcast %38 : vector<8x1xf32> to vector<8x8xf32>
    %40 = arith.subf %36, %39 : vector<8x8xf32>
    %41 = math.exp %40 : vector<8x8xf32>
    %cst_19 = arith.constant dense<0.000000e+00> : vector<8x8xf32>
    %42 = tpu.matmul %41, %33, %cst_19 {dimension_numbers = #tpu.dot_dimension_numbers<[1], [0], [0], [1], [0, 0, 1, 1], [], []>} : vector<8x8xf32>, vector<8x8xf32>, vector<8x8xf32> -> vector<8x8xf32>
    %cst_20 = arith.constant dense<0.000000e+00> : vector<8xf32>
    %43 = vector.multi_reduction <add>, %41, %cst_20 [1] : vector<8x8xf32> to vector<8xf32>
    %44 = vector.shape_cast %43 : vector<8xf32> to vector<8x1xf32>
    %45 = tpu.reciprocal %44 : vector<8x1xf32> -> vector<8x1xf32>
    %46 = vector.broadcast %45 : vector<8x1xf32> to vector<8x8xf32>
    %47 = arith.mulf %42, %46 : vector<8x8xf32>
    %c0_21 = arith.constant 0 : index
    %c8 = arith.constant 8 : index
    %48 = vector.load %arg13[%c0_21, %c8] : memref<8x32xf32, #tpu.memory_space<vmem>>, vector<8x8xf32>
    tpu.vector_store %arg13[%c0_21, %c8], %47 {strides = array<i32>} : memref<8x32xf32, #tpu.memory_space<vmem>>, vector<8x8xf32>,
    %49 = vector.extract_strided_slice %10 {offsets = [0, 48], sizes = [8, 8], strides = [1, 1]} : vector<8x96xf32> to vector<8x8xf32>
    %50 = vector.extract_strided_slice %10 {offsets = [0, 56], sizes = [8, 8], strides = [1, 1]} : vector<8x96xf32> to vector<8x8xf32>
    %51 = vector.extract_strided_slice %10 {offsets = [0, 64], sizes = [8, 8], strides = [1, 1]} : vector<8x96xf32> to vector<8x8xf32>
    %cst_22 = arith.constant dense<0.000000e+00> : vector<8x8xf32>
    %52 = tpu.matmul %49, %50, %cst_22 {dimension_numbers = #tpu.dot_dimension_numbers<[1], [1], [0], [0], [0, 0, 1, 0], [], []>} : vector<8x8xf32>, vector<8x8xf32>, vector<8x8xf32> -> vector<8x8xf32>
    %53 = vector.broadcast %12 : vector<1x8xf32> to vector<8x8xf32>
    %54 = arith.addf %52, %53 : vector<8x8xf32>
    %cst_23 = arith.constant dense<0xFF800000> : vector<8xf32>
    %55 = vector.multi_reduction <maximumf>, %54, %cst_23 [1] : vector<8x8xf32> to vector<8xf32>
    %56 = vector.shape_cast %55 : vector<8xf32> to vector<8x1xf32>
    %57 = vector.broadcast %56 : vector<8x1xf32> to vector<8x8xf32>
    %58 = arith.subf %54, %57 : vector<8x8xf32>
    %59 = math.exp %58 : vector<8x8xf32>
    %cst_24 = arith.constant dense<0.000000e+00> : vector<8x8xf32>
    %60 = tpu.matmul %59, %51, %cst_24 {dimension_numbers = #tpu.dot_dimension_numbers<[1], [0], [0], [1], [0, 0, 1, 1], [], []>} : vector<8x8xf32>, vector<8x8xf32>, vector<8x8xf32> -> vector<8x8xf32>
    %cst_25 = arith.constant dense<0.000000e+00> : vector<8xf32>
    %61 = vector.multi_reduction <add>, %59, %cst_25 [1] : vector<8x8xf32> to vector<8xf32>
    %62 = vector.shape_cast %61 : vector<8xf32> to vector<8x1xf32>
    %63 = tpu.reciprocal %62 : vector<8x1xf32> -> vector<8x1xf32>
    %64 = vector.broadcast %63 : vector<8x1xf32> to vector<8x8xf32>
    %65 = arith.mulf %60, %64 : vector<8x8xf32>
    %c0_26 = arith.constant 0 : index
    %c16 = arith.constant 16 : index
    %66 = vector.load %arg13[%c0_26, %c16] : memref<8x32xf32, #tpu.memory_space<vmem>>, vector<8x8xf32>
    tpu.vector_store %arg13[%c0_26, %c16], %65 {strides = array<i32>} : memref<8x32xf32, #tpu.memory_space<vmem>>, vector<8x8xf32>,
    %67 = vector.extract_strided_slice %10 {offsets = [0, 72], sizes = [8, 8], strides = [1, 1]} : vector<8x96xf32> to vector<8x8xf32>
    %68 = vector.extract_strided_slice %10 {offsets = [0, 80], sizes = [8, 8], strides = [1, 1]} : vector<8x96xf32> to vector<8x8xf32>
    %69 = vector.extract_strided_slice %10 {offsets = [0, 88], sizes = [8, 8], strides = [1, 1]} : vector<8x96xf32> to vector<8x8xf32>
    %cst_27 = arith.constant dense<0.000000e+00> : vector<8x8xf32>
    %70 = tpu.matmul %67, %68, %cst_27 {dimension_numbers = #tpu.dot_dimension_numbers<[1], [1], [0], [0], [0, 0, 1, 0], [], []>} : vector<8x8xf32>, vector<8x8xf32>, vector<8x8xf32> -> vector<8x8xf32>
    %71 = vector.broadcast %12 : vector<1x8xf32> to vector<8x8xf32>
    %72 = arith.addf %70, %71 : vector<8x8xf32>
    %cst_28 = arith.constant dense<0xFF800000> : vector<8xf32>
    %73 = vector.multi_reduction <maximumf>, %72, %cst_28 [1] : vector<8x8xf32> to vector<8xf32>
    %74 = vector.shape_cast %73 : vector<8xf32> to vector<8x1xf32>
    %75 = vector.broadcast %74 : vector<8x1xf32> to vector<8x8xf32>
    %76 = arith.subf %72, %75 : vector<8x8xf32>
    %77 = math.exp %76 : vector<8x8xf32>
    %cst_29 = arith.constant dense<0.000000e+00> : vector<8x8xf32>
    %78 = tpu.matmul %77, %69, %cst_29 {dimension_numbers = #tpu.dot_dimension_numbers<[1], [0], [0], [1], [0, 0, 1, 1], [], []>} : vector<8x8xf32>, vector<8x8xf32>, vector<8x8xf32> -> vector<8x8xf32>
    %cst_30 = arith.constant dense<0.000000e+00> : vector<8xf32>
    %79 = vector.multi_reduction <add>, %77, %cst_30 [1] : vector<8x8xf32> to vector<8xf32>
    %80 = vector.shape_cast %79 : vector<8xf32> to vector<8x1xf32>
    %81 = tpu.reciprocal %80 : vector<8x1xf32> -> vector<8x1xf32>
    %82 = vector.broadcast %81 : vector<8x1xf32> to vector<8x8xf32>
    %83 = arith.mulf %78, %82 : vector<8x8xf32>
    %c0_31 = arith.constant 0 : index
    %c24 = arith.constant 24 : index
    %84 = vector.load %arg13[%c0_31, %c24] : memref<8x32xf32, #tpu.memory_space<vmem>>, vector<8x8xf32>
    tpu.vector_store %arg13[%c0_31, %c24], %83 {strides = array<i32>} : memref<8x32xf32, #tpu.memory_space<vmem>>, vector<8x8xf32>,
    %c0_32 = arith.constant 0 : index
    %c0_33 = arith.constant 0 : index
    %85 = vector.load %arg11[%c0_32, %c0_33] : memref<8x32xf32, #tpu.memory_space<vmem>>, vector<8x32xf32>
    %c0_34 = arith.constant 0 : index
    %c0_35 = arith.constant 0 : index
    %86 = vector.load %arg13[%c0_34, %c0_35] : memref<8x32xf32, #tpu.memory_space<vmem>>, vector<8x32xf32>
    %c0_36 = arith.constant 0 : index
    %c0_37 = arith.constant 0 : index
    %c0_38 = arith.constant 0 : index
    %87 = vector.load %arg6[%c0_36, %c0_37, %c0_38] : memref<1x32x32xf32, #tpu.memory_space<vmem>>, vector<1x32x32xf32>
    %88 = vector.shape_cast %87 : vector<1x32x32xf32> to vector<32x32xf32>
    %cst_39 = arith.constant dense<0.000000e+00> : vector<8x32xf32>
    %89 = tpu.matmul %86, %88, %cst_39 {dimension_numbers = #tpu.dot_dimension_numbers<[1], [0], [0], [1], [0, 0, 1, 1], [], []>} : vector<8x32xf32>, vector<32x32xf32>, vector<8x32xf32> -> vector<8x32xf32>
    %90 = arith.addf %85, %89 : vector<8x32xf32>
    %c0_40 = arith.constant 0 : index
    %c0_41 = arith.constant 0 : index
    %91 = vector.load %arg11[%c0_40, %c0_41] : memref<8x32xf32, #tpu.memory_space<vmem>>, vector<8x32xf32>
    tpu.vector_store %arg11[%c0_40, %c0_41], %90 {strides = array<i32>} : memref<8x32xf32, #tpu.memory_space<vmem>>, vector<8x32xf32>,
    %c0_i32_42 = arith.constant 0 : i32
    %92 = arith.cmpi eq, %arg1, %c0_i32_42 : i32
    %93 = arith.extui %92 : i1 to i32
    %c0_i32_43 = arith.constant 0 : i32
    %94 = arith.cmpi ne, %93, %c0_i32_43 : i32
    scf.if %94 {
      %c0_44 = arith.constant 0 : index
      %c0_45 = arith.constant 0 : index
      %95 = vector.load %arg11[%c0_44, %c0_45] : memref<8x32xf32, #tpu.memory_space<vmem>>, vector<8x32xf32>
      %c0_46 = arith.constant 0 : index
      %c0_47 = arith.constant 0 : index
      %96 = vector.load %arg7[%c0_46, %c0_47] : memref<1x32xf32, #tpu.memory_space<vmem>>, vector<1x32xf32>
      %97 = vector.broadcast %96 : vector<1x32xf32> to vector<8x32xf32>
      %98 = arith.addf %95, %97 : vector<8x32xf32>
      %c0_48 = arith.constant 0 : index
      %c0_49 = arith.constant 0 : index
      %c0_50 = arith.constant 0 : index
      %99 = vector.load %arg2[%c0_48, %c0_49, %c0_50] : memref<1x8x32xf32, #tpu.memory_space<vmem>>, vector<1x8x32xf32>
      %100 = vector.shape_cast %99 : vector<1x8x32xf32> to vector<8x32xf32>
      %101 = arith.addf %98, %100 : vector<8x32xf32>
      %c0_51 = arith.constant 0 : index
      %c0_52 = arith.constant 0 : index
      %102 = vector.load %arg8[%c0_51, %c0_52] : memref<1x32xf32, #tpu.memory_space<vmem>>, vector<1x32xf32>
      %c0_53 = arith.constant 0 : index
      %c0_54 = arith.constant 0 : index
      %103 = vector.load %arg9[%c0_53, %c0_54] : memref<1x32xf32, #tpu.memory_space<vmem>>, vector<1x32xf32>
      %cst_55 = arith.constant dense<0.000000e+00> : vector<8xf32>
      %104 = vector.multi_reduction <add>, %101, %cst_55 [1] : vector<8x32xf32> to vector<8xf32>
      %105 = vector.shape_cast %104 : vector<8xf32> to vector<8x1xf32>
      %cst_56 = arith.constant 3.200000e+01 : f32
      %106 = vector.broadcast %cst_56 : f32 to vector<8x1xf32>
      %107 = arith.divf %105, %106 : vector<8x1xf32>
      %108 = vector.broadcast %107 : vector<8x1xf32> to vector<8x32xf32>
      %109 = arith.subf %101, %108 : vector<8x32xf32>
      %110 = arith.mulf %109, %109 : vector<8x32xf32>
      %cst_57 = arith.constant dense<0.000000e+00> : vector<8xf32>
      %111 = vector.multi_reduction <add>, %110, %cst_57 [1] : vector<8x32xf32> to vector<8xf32>
      %112 = vector.shape_cast %111 : vector<8xf32> to vector<8x1xf32>
      %cst_58 = arith.constant 3.200000e+01 : f32
      %113 = vector.broadcast %cst_58 : f32 to vector<8x1xf32>
      %114 = arith.divf %112, %113 : vector<8x1xf32>
      %cst_59 = arith.constant 9.99999974E-6 : f32
      %115 = vector.broadcast %cst_59 : f32 to vector<8x1xf32>
      %116 = arith.addf %114, %115 : vector<8x1xf32>
      %117 = math.rsqrt %116 : vector<8x1xf32>
      %118 = vector.broadcast %117 : vector<8x1xf32> to vector<8x32xf32>
      %119 = arith.mulf %109, %118 : vector<8x32xf32>
      %120 = vector.broadcast %102 : vector<1x32xf32> to vector<8x32xf32>
      %121 = arith.mulf %119, %120 : vector<8x32xf32>
      %122 = vector.broadcast %103 : vector<1x32xf32> to vector<8x32xf32>
      %123 = arith.addf %121, %122 : vector<8x32xf32>
      %c0_60 = arith.constant 0 : index
      %c0_61 = arith.constant 0 : index
      %c0_62 = arith.constant 0 : index
      %124 = vector.load %arg10[%c0_60, %c0_61, %c0_62] : memref<1x8x32xf32, #tpu.memory_space<vmem>>, vector<1x8x32xf32>
      %125 = vector.shape_cast %124 : vector<1x8x32xf32> to vector<8x32xf32>
      %126 = vector.shape_cast %123 : vector<8x32xf32> to vector<1x8x32xf32>
      tpu.vector_store %arg10[%c0_60, %c0_61, %c0_62], %126 {strides = array<i32>} : memref<1x8x32xf32, #tpu.memory_space<vmem>>, vector<1x8x32xf32>,
    } else {
    }
    return
  }
  func.func @transform_0(%arg0: i32, %arg1: i32) -> (i32, i32, i32) {
    %c0_i32 = arith.constant 0 : i32
    %c0_i32_0 = arith.constant 0 : i32
    %c0_i32_1 = arith.constant 0 : i32
    return %arg0, %c0_i32, %c0_i32_0 : i32, i32, i32
  }
  func.func @transform_1(%arg0: i32, %arg1: i32) -> (i32, i32, i32) {
    %c0_i32 = arith.constant 0 : i32
    %c0_i32_0 = arith.constant 0 : i32
    %c0_i32_1 = arith.constant 0 : i32
    return %arg0, %c0_i32, %c0_i32_0 : i32, i32, i32
  }
  func.func @transform_2(%arg0: i32, %arg1: i32) -> (i32, i32, i32) {
    %c0_i32 = arith.constant 0 : i32
    %c0_i32_0 = arith.constant 0 : i32
    %c0_i32_1 = arith.constant 0 : i32
    return %arg1, %c0_i32, %c0_i32_0 : i32, i32, i32
  }
  func.func @transform_3(%arg0: i32, %arg1: i32) -> (i32, i32, i32) {
    %c0_i32 = arith.constant 0 : i32
    %c0_i32_0 = arith.constant 0 : i32
    %c0_i32_1 = arith.constant 0 : i32
    return %arg1, %c0_i32, %c0_i32_0 : i32, i32, i32
  }
  func.func @transform_4(%arg0: i32, %arg1: i32) -> (i32, i32, i32) {
    %c0_i32 = arith.constant 0 : i32
    %c0_i32_0 = arith.constant 0 : i32
    %c0_i32_1 = arith.constant 0 : i32
    return %arg1, %c0_i32, %c0_i32_0 : i32, i32, i32
  }
  func.func @transform_5(%arg0: i32, %arg1: i32) -> (i32, i32) {
    %c0_i32 = arith.constant 0 : i32
    %c0_i32_0 = arith.constant 0 : i32
    %c0_i32_1 = arith.constant 0 : i32
    return %c0_i32, %c0_i32_0 : i32, i32
  }
  func.func @transform_6(%arg0: i32, %arg1: i32) -> (i32, i32) {
    %c0_i32 = arith.constant 0 : i32
    %c0_i32_0 = arith.constant 0 : i32
    %c0_i32_1 = arith.constant 0 : i32
    return %c0_i32, %c0_i32_0 : i32, i32
  }
  func.func @transform_7(%arg0: i32, %arg1: i32) -> (i32, i32) {
    %c0_i32 = arith.constant 0 : i32
    %c0_i32_0 = arith.constant 0 : i32
    %c0_i32_1 = arith.constant 0 : i32
    return %c0_i32, %c0_i32_0 : i32, i32
  }
  func.func @transform_8(%arg0: i32, %arg1: i32) -> (i32, i32, i32) {
    %c0_i32 = arith.constant 0 : i32
    %c0_i32_0 = arith.constant 0 : i32
    %c0_i32_1 = arith.constant 0 : i32
    return %arg0, %c0_i32, %c0_i32_0 : i32, i32, i32
  }
}

</mosaic_0001>

<bundles_post_ra>
// kernel: tpu_custom_call.1
= control target key start
LH: loop header
LB: loop body
LE: loop exit
PB: predicated region body
PF: predicated region fallthrough
CT: control target
= control target key end

     0   :  { %s2298_s0 = inlined_call_operand.hbm [shape: f32[2,8,32], index: 0, kind: input, shape index: {}]   ;;  %s2299_s1 = inlined_call_operand.vmem [shape: f32[2,1,8], index: 1, kind: input, shape index: {}]   ;;  %s2300_s2 = inlined_call_operand.hbm [shape: f32[1,32,96], index: 2, kind: input, shape index: {}]   ;;  %s2301_s3 = inlined_call_operand.vmem [shape: f32[1,1,96], index: 3, kind: input, shape index: {}]   ;;  %s2302_s4 = inlined_call_operand.hbm [shape: f32[1,32,32], index: 4, kind: input, shape index: {}]   ;;  %s2303_s5 = inlined_call_operand.vmem [shape: f32[1,32], index: 5, kind: input, shape index: {}]   ;;  %s2304_s6 = inlined_call_operand.vmem [shape: f32[1,32], index: 6, kind: input, shape index: {}]   ;;  %s2305_s7 = inlined_call_operand.vmem [shape: f32[1,32], index: 7, kind: input, shape index: {}]   ;;  %s2306_s8 = inlined_call_operand.hbm [shape: f32[2,8,32], index: 8, kind: output, shape index: {}]  }
   0x1   :  { %2314 = sst [smem:[#allocation17_spill]] %s2306_s8 }
   0x2   :  { %13 = vsyncpa [#allocation6], 0 }
   0x3   :  { %15 = vsyncpa [#allocation6 + $0x1], 0 }
   0x4   :  { %16 = vsyncpa [#allocation9], 0 }
   0x5   :  { %17 = vsyncpa [#allocation7], 0 }
   0x6   :  { %19 = vsyncpa [#allocation7 + $0x1], 0  ;;  %s1947_s27 = smov 0   ;;  %s1949_s28 = smov 0  }
   0x7   :  { %s1951_s29 = smov 0   ;;  %s1953_s30 = smov 0  }
   0x8   :  { %s1955_s9 = smov 0   ;;  %s1957_s10 = smov 0  }
   0x9 LB: > { %2315 = sst [smem:[#allocation15_spill]] %s1857_s27  ;;  %s1448_s11 = sadd.s32 4294967295, %s1877_s10   ;;  %s1877_s10 = sphi %s1957_s10, %s25_s10   ;;  %s1873_s9 = sphi %s1955_s9, %s2337_s9   ;;  %s1869_s30 = sphi %s1953_s30, %s2336_s30   ;;  %s1865_s29 = sphi %s1951_s29, %s2335_s29   ;;  %s1861_s28 = sphi %s1949_s28, %s2334_s28   ;;  %s1857_s27 = sphi %s1947_s27, %s2333_s27  }
   0xa   : > { %s1449_s12 = sadd.s32 4294967294, %s1877_s10   ;;  %p57_p0 = scmp.ne.s32.totalorder %s1861_s28, %s1857_s27 }
   0xb   : > { %p1981_p1 = scmp.eq.s32.totalorder %s1448_s11, 0  ;;  %p1985_p2 = scmp.eq.s32.totalorder %s1448_s11, 1 }
   0xc   : > { %p254_p3 = scmp.eq.s32.totalorder %s1449_s12, 1  ;;  %p1450_p5 = scmp.ge.s32.totalorder %s1877_s10, 1 }
   0xd   : > { %s2316_s13 = scalar_select %p1981_p1, 1, 0 }
   0xe   : > { %p1991_p4 = por %p1981_p1, %p57_p0  ;;  %p1996_p6 = por %p254_p3, %p57_p0 }
   0xf   : > { %p261_p7 = scmp.lt.s32.totalorder %s1877_s10, 3  ;;  %s1879_s18 = smov [#allocation8]  }
  0x10   : > { %s2318_s15 = scalar_select %p1991_p4, 1, 0 }
  0x11   : > { %s2319_s16 = scalar_select %p1996_p6, 1, 0 }
  0x12   : > { %p2001_p8 = pnand %p1450_p5, %p261_p7  ;;  %s276_s19 = sshll.u32 %s1879_s18, 4  ;;  %s2005_s19 = int_to_ptr.vmem [resolvable:$true] %s276_s19 }
  0x13   : > { %2320 = sst [smem:[#allocation16_spill]] %s2319_s16  ;;  %s1880_s21 = smov [#allocation10]  }
  0x14   : > { %p1597_p9 = pneg %p2001_p8  ;;  %s298_s22 = sshll.u32 %s1880_s21, 4  ;;  %s2016_s22 = int_to_ptr.vmem [resolvable:$true] %s298_s22 }
  0x15   : > { %s1705_s25 = scalar_lea.hbm %s2300_s2, 512 }
  0x16   : > { %p2012_p11 = pnand %p1597_p9, %p1981_p1  ;;  %p1706_p12 = scmp.ne.s32.totalorder %s2300_s2, %s1705_s25 }
  0x17   : > { %p1712_p5 = scmp.lt.u32.totalorder %s1705_s25, %s2300_s2 }
  0x18   : > { %p1707_p13 = pneg %p2012_p11 }
  0x1a   : > { %p1708_p0 = pnand %p1707_p13, %p1706_p12 }
  0x1c   : > { %p1709_p3 = pneg %p1708_p0 }
  0x1e   : > { %p1714_p7 = pnand %p1712_p5, %p1709_p3 }
  0x20   : > { %1717 = shalt.err (!%p1714_p7)
}
  0x21   : > { %s1718_s21 = scalar_lea.vmem %s2005_s19, 512  ;;  %p1726_p1 = scmp.lt.s32.totalorder %s2005_s19, %s2005_s19 }
  0x22   : > { %p1719_p9 = scmp.ne.s32.totalorder %s2005_s19, %s1718_s21  ;;  %p1727_p12 = scmp.lt.s32.totalorder %s1718_s21, %s1718_s21 }
  0x24   : > { %p1721_p10 = pnand %p1719_p9, %p1707_p13  ;;  %p1728_p0 = por %p1727_p12, %p1726_p1 }
  0x26   : > { %p1722_p6 = pneg %p1721_p10 }
  0x28   : > { %p1729_p4 = pnand %p1728_p0, %p1722_p6 }
  0x2a   : > { %1732 = shalt.err (!%p1729_p4)
}
  0x2b   : > { %s1881_s23 = smov 128   ;;  %s1882_s24 = smov 8  }
  0x2c   : > { %1600 = dma.hbm_to_vmem [thread:$0]  (!%p2012_p11), %s2300_s2, 512, %s2005_s19, [#allocation9], %s1881_s23, %s1881_s23, %s1882_s24  }
  0x2d   : > { %s1733_s18 = scalar_lea.hbm %s2302_s4, 512 }
  0x2e   : > { %p1734_p1 = scmp.ne.s32.totalorder %s2302_s4, %s1733_s18  ;;  %p1740_p10 = scmp.lt.u32.totalorder %s1733_s18, %s2302_s4 }
  0x30   : > { %p1736_p4 = pnand %p1734_p1, %p1707_p13 }
  0x32   : > { %p1737_p6 = pneg %p1736_p4 }
  0x34   : > { %p1742_p3 = pnand %p1740_p10, %p1737_p6 }
  0x36   : > { %1745 = shalt.err (!%p1742_p3)
}
  0x37   : > { %s1746_s19 = scalar_lea.vmem %s2016_s22, 512  ;;  %p1754_p12 = scmp.lt.s32.totalorder %s2016_s22, %s2016_s22 }
  0x38   : > { %p1747_p5 = scmp.ne.s32.totalorder %s2016_s22, %s1746_s19  ;;  %p1755_p0 = scmp.lt.s32.totalorder %s1746_s19, %s1746_s19 }
  0x3a   : > { %p1749_p7 = pnand %p1747_p5, %p1707_p13  ;;  %p1756_p1 = por %p1755_p0, %p1754_p12 }
  0x3c   : > { %p1750_p9 = pneg %p1749_p7 }
  0x3e   : > { %p1757_p4 = pnand %p1756_p1, %p1750_p9 }
  0x40   : > { %1760 = shalt.err (!%p1757_p4)
}
  0x41   : > { %1603 = dma.hbm_to_vmem [thread:$0]  (!%p2012_p11), %s2302_s4, 512, %s2016_s22, [#allocation9], %s1881_s23, %s1881_s23, %s1882_s24  }
  0x42   : > { %s37_s16 = sadd.s32 1, %s1873_s9  ;;  %s44_s25 = sadd.s32 1, %s1865_s29 }
  0x43   : > { %p39_p13 = scmp.ge.s32.totalorder %s37_s16, 2  ;;  %p51_p6 = scmp.ne.s32.totalorder %s1865_s29, %s1861_s28 }
  0x44   : > { %p52_p10 = scmp.eq.s32.totalorder %s1877_s10, 0  ;;  %p1614_p3 = scmp.lt.s32.totalorder %s1877_s10, 2 }
  0x45   : > { %s2339_s16 = smov (%p39_p13, %s37_s16), 0  ;;  %p2080_p7 = por %p1985_p2, %p51_p6 }
  0x46   : > { %p53_p5 = por %p52_p10, %p51_p6  ;;  %s41_s26 = ssub.s32 %s1873_s9, %s2339_s16 }
  0x47   : > { %s2323_s20 = scalar_select %p2080_p7, 1, 0 }
  0x48   : > { %s321_s11 = sand.u32 1, %s1865_s29   ;;  %p42_p9 = scmp.eq.s32.totalorder %s41_s26, 0 }
  0x49   : > { %s1455_s22 = sshll.u32 %s321_s11, 3  ;;  %s1456_s23 = sshll.u32 %s1873_s9, 7 }
  0x4a   : > { %s2089_s24 = scalar_select %p42_p9, %s1865_s29, %s44_s25  }
  0x4b   : > { %s2094_s21 = scalar_lea.hbm %s2298_s0, %s1456_s23  ;;  %s325_s14 = scalar_lea.vmem [#allocation5], %s1455_s22 }
  0x4c   : > { %s332_s19 = sshll.u32 %s325_s14, 4  ;;  %p2098_p2 = pnand %p1614_p3, %p53_p5  ;;  %s2102_s19 = int_to_ptr.vmem [resolvable:$true] %s332_s19 }
  0x4d   : > { %s322_s27 = scalar_lea.sflag [#allocation6], %s321_s11  ;;  %s1761_s25 = scalar_lea.hbm %s2094_s21, 128 }
  0x4e   : > { %p1762_p11 = scmp.ne.s32.totalorder %s2094_s21, %s1761_s25  ;;  %p1763_p12 = pneg %p2098_p2 }
  0x4f   : > { %s1766_s23 = scalar_lea.hbm %s2298_s0, 256  ;;  %p1767_p4 = scmp.lt.u32.totalorder %s2094_s21, %s2298_s0 }
  0x50   : > { %p1764_p0 = pnand %p1763_p12, %p1762_p11  ;;  %p1768_p13 = scmp.lt.u32.totalorder %s1766_s23, %s1761_s25 }
  0x51   : > { %p1770_p10 = scmp.lt.u32.totalorder %s1761_s25, %s2094_s21 }
  0x52   : > { %p1765_p1 = pneg %p1764_p0  ;;  %p1769_p6 = por %p1768_p13, %p1767_p4 }
  0x54   : > { %p1771_p3 = por %p1770_p10, %p1769_p6 }
  0x56   : > { %p1772_p5 = pnand %p1771_p3, %p1765_p1 }
  0x58   : > { %1775 = shalt.err (!%p1772_p5)
}
  0x59   : > { %s1776_s11 = scalar_lea.vmem %s2102_s19, 128  ;;  %s1883_s14 = smov [#allocation5]  }
  0x5a   : > { %p1777_p9 = scmp.ne.s32.totalorder %s2102_s19, %s1776_s11  ;;  %s1781_s26 = sshll.u32 %s1883_s14, 4  ;;  %s1782_s26 = int_to_ptr.vmem [resolvable:$false] %s1781_s26 }
  0x5b   : > { %s1783_s22 = scalar_lea.vmem %s1782_s26, 256  ;;  %p1784_p7 = scmp.lt.s32.totalorder %s2102_s19, %s1782_s26 }
  0x5c   : > { %p1779_p11 = pnand %p1777_p9, %p1763_p12  ;;  %p1785_p4 = scmp.lt.s32.totalorder %s1783_s22, %s1776_s11 }
  0x5e   : > { %p1780_p0 = pneg %p1779_p11  ;;  %p1786_p13 = por %p1785_p4, %p1784_p7 }
  0x60   : > { %p1787_p6 = pnand %p1786_p13, %p1780_p0 }
  0x62   : > { %1790 = shalt.err (!%p1787_p6)
}
  0x63   : > { %1607 = dma.hbm_to_vmem [thread:$0]  (!%p2098_p2), %s2094_s21, 128, %s2102_s19, %s322_s27  }
  0x64   : > { %347 = sbr.rel (%p2001_p8) target bundleno = 2101 (0x835), region = 52  ;;  %s2132_s25 = sand.u32 (!%p2001_p8), 1, %s1861_s28  }
  0x65   : > { %s1458_s23 = sshll.u32 (!%p2001_p8), %s2132_s25, 3  ;;  %s350_s12 = scalar_lea.sflag (!%p2001_p8), [#allocation6], %s2132_s25 }
  0x66   : > { %s353_s18 = scalar_lea.vmem (!%p2001_p8), [#allocation5], %s1458_s23  ;;  %p2325_p7 = scmp.ne.s32.totalorder (!%p2001_p8), %s2318_s15, 0 }
  0x6b   : > { %1844 = dma.done.wait (%p2325_p7), %s350_s12, 128  }
  0x6c   : > { %1846 = vsyncadd (%p2325_p7), %s350_s12, 4294967168  ;;  %p2326_p2 = scmp.ne.s32.totalorder %s2316_s13, 0 }
  0x6e   : > { %1848 = dma.done.wait (%p2326_p2), [#allocation9], 1024  }
  0x6f   : > { %1850 = vsyncadd (%p2326_p2), [#allocation9], 4294966272  ;;  %vm411_vm0 = vcmask 261120   ;;  %v1884_v0 = vmov 0.0|0.0   ;;  %vm1885_vm1 = vmmov 0   ;;  %v1886_v1 = vmov 0.0  }
  0x70   : > { %1573 = vmatprep.subr.bf16.mxu0 %v1884_v0  ;;  %1519 = vmatprep.mubr.msk.f32.mxu0 %vm1885_vm1, %v1886_v1  ;;  %413 = vst.msk [vmem:[#allocation2] sm:$0xff] %vm411_vm0, %v1886_v1  ;;  %v415_v2 = vld [vmem:[#allocation8] sm:$0xff]  ;;  %v416_v3 = vld [vmem:[#allocation8 + $0x8] sm:$0xff]  ;;  %v417_v4 = vld [vmem:[#allocation8 + $0x10] sm:$0xff]  ;;  %s1887_s17 = smov 112   ;;  %s1888_s21 = smov 120  }
  0x71   : > { %1522 = vmatprep.subr.mxu1 %v1886_v1  ;;  %1524 = vmatprep.mubr.msk.f32.mxu1 %vm1885_vm1, %v1886_v1  ;;  %v1574_v5 = vpack.c.bf16 %v416_v3, %v415_v2  ;;  %v418_v6 = vld [vmem:[#allocation8 + $0x18] sm:$0xff]  ;;  %s1889_s19 = smov 96   ;;  %s1890_s8 = smov 104   ;;  %vm510_vm2 = vcmask 64512   ;;  %vm842_vm3 = vcmask 130112   ;;  %vm1013_vm4 = vcmask 195712  }
  0x72   : > { %v2154_v7 = vld [vmem:[%s353_s18] sm:$0xff]  ;;  %v1577_v8 = vpack.c.bf16 %v418_v6, %v417_v4  ;;  %s1891_s27 = smov 72   ;;  %s1892_s11 = smov 80   ;;  %vm1184_vm5 = vcmask 261312  }
  0x73   : > { %412 = vst.msk [vmem:[#allocation3] sm:$0xff] %vm411_vm0, %v2154_v7  ;;  %1575 = vmatpush3.bf16.msra.mxu0 %v1574_v5  ;;  %v1462_v10 = vld [vmem:[%s2301_s3] ss:$0 sm:$0xff]  ;;  %s1893_s14 = smov 48   ;;  %s1894_s26 = smov 56  }
  0x74   : > { %1576 = vmatprep.subr.bf16.mxu0 %v1884_v0  ;;  %p400_p8 = scmp.lt.s32.totalorder %s1869_s30, 1  ;;  %s1895_s15 = smov 88  }
  0x75   : > { %p2328_p1 = scmp.ne.s32.totalorder %s2323_s20, 0 }
  0x76   : > { %s401_s22 = scalar_select %p400_p8, %s1869_s30, 1 }
  0x77   : > { %1578 = vmatpush3.bf16.msra.mxu0 %v1577_v8 }
  0x78   : > { %1542 = vmatprep.subr.mxu0 %v1886_v1  ;;  %s402_s13 = scalar_lea.vmem %s2299_s1, %s401_s22 }
  0x79   : > { %v1464_v22 = vld [vmem:[%s402_s13] ss:$0 sm:$0xff]  ;;  %s1482_s13 = sshll.u32 %s1869_s30, 7  ;;  %s1901_s30 = smov [#allocation11]  }
  0x7a   : > { %v414_v9 = vld [vmem:[#allocation3] sm:$0xff] }
  0x7b   : > { %1520 = vmatmul.mubr.msk.f32.vlgmr.msra.gmra.mrb[0].mxu0 %vm411_vm0, %v414_v9  ;;  %v1188_v9 = vld [vmem:[#allocation10] sm:$0xff] }
  0x7c   : > { %1544 = vmatprep.mubr.msk.f32.mxu0 %vm1885_vm1, %v1886_v1 }
 0x14e   : > { %v496_v11 = vpop.f32.mrb[0].mxu0 }
 0x14f   : > { %v2166_v12 = vadd.f32 %v1462_v10, %v496_v11  ;;  %v1521_v13 = vpop.f32.mrb[1].mxu0  ;;  %v1189_v10 = vld [vmem:[#allocation10 + $0x8] sm:$0xff]  ;;  %v1190_v11 = vld [vmem:[#allocation10 + $0x10] sm:$0xff] }
 0x151   : > { %591 = vrot.lane.b32.xlu1 %v2166_v12, %s1887_s17  ;;  %508 = vrot.lane.b32.xlu0 %v2166_v12, %s1888_s21  ;;  %s1896_s17 = smov 40   ;;  %s1897_s21 = smov 64  }
 0x155   : > { %675 = vrot.lane.b32.xlu1 %v2166_v12, %s1889_s19  ;;  %s1898_s19 = smov 8  }
 0x159   : > { %673 = vrot.lane.b32.xlu1 %v2166_v12, %s1890_s8  ;;  %s1899_s8 = smov 16  }
 0x15d   : > { %846 = vrot.lane.b32.xlu1 %v2166_v12, %s1891_s27  ;;  %s1900_s27 = smov 24  }
 0x161   : > { %844 = vrot.lane.b32.xlu1 %v2166_v12, %s1892_s11  ;;  %s1313_s11 = scalar_lea.sflag [#allocation7], %s2132_s25 }
 0x165   : > { %1017 = vrot.lane.b32.xlu1 %v2166_v12, %s1893_s14 }
 0x169   : > { %1015 = vrot.lane.b32.xlu1 %v2166_v12, %s1894_s26 }
 0x1c3   : > { %v592_v14 = vpop.permute.xlu1 %591  ;;  %v509_v15 = vpop.permute.xlu0 %508 }
 0x1c4   : > { %1523 = vmatpush3.xpose.msk.msra.mxu1 %vm510_vm2, %v509_v15 }
 0x1c5   : > { %1527 = vmatprep.subr.mxu1 %v1886_v1 }
 0x1c7   : > { %v676_v16 = vpop.permute.xlu1 %675  ;;  %1525 = vmatmul.mubr.msk.f32.vlgmr.msra.gmra.mrb[0].mxu1 %vm510_vm2, %v2166_v12 }
 0x1c8   : > { %1528 = vmatpush3.msra.mxu1 %v592_v14  ;;  %1529 = vmatprep.mubr.msk.f32.mxu1 %vm1885_vm1, %v1886_v1 }
 0x1c9   : > { %1532 = vmatprep.subr.mxu1 %v1886_v1 }
 0x1cb   : > { %v674_v17 = vpop.permute.xlu1 %673 }
 0x1cf   : > { %v847_v18 = vpop.permute.xlu1 %846 }
 0x1d0   : > { %1543 = vmatpush3.xpose.msk.msra.mxu0 %vm510_vm2, %v847_v18 }
 0x1d1   : > { %1552 = vmatprep.subr.mxu0 %v1886_v1 }
 0x1d3   : > { %v845_v19 = vpop.permute.xlu1 %844 }
 0x1d4   : > { %1545 = vmatmul.mubr.msk.f32.vlgmr.msra.gmra.mrb[2].mxu0 %vm510_vm2, %v845_v19 }
 0x1d5   : > { %1554 = vmatprep.mubr.msk.f32.mxu0 %vm1885_vm1, %v1886_v1 }
 0x1d7   : > { %v1018_v20 = vpop.permute.xlu1 %1017 }
 0x1d8   : > { %1553 = vmatpush3.xpose.msk.msra.mxu0 %vm510_vm2, %v1018_v20 }
 0x1d9   : > { %1579 = vmatprep.subr.bf16.mxu0 %v1884_v0 }
 0x1db   : > { %v1016_v21 = vpop.permute.xlu1 %1015 }
 0x1dc   : > { %1555 = vmatmul.mubr.msk.f32.vlgmr.msra.gmra.mrb[4].mxu0 %vm510_vm2, %v1016_v21 }
 0x1dd   : > { %1570 = vmatprep.mubr.msk.f32.mxu0 %vm1885_vm1, %v1886_v1 }
 0x29a   : > { %v581_v23 = vpop.f32.mrb[0].mxu1 }
 0x29b   : > { %v582_v24 = vadd.f32 %v1464_v22, %v581_v23  ;;  %v1526_v25 = vpop.f32.mrb[1].mxu1 }
 0x29d   : > { %v585_v26 = vsel %vm510_vm2, %v582_v24, -inf }
 0x29e   : > { %586 = vmax.xlane.f32.xlu0 %v585_v26 }
 0x2a7   : > { %v918_v27 = vpop.f32.mrb[2].mxu0 }
 0x2a8   : > { %v1546_v28 = vpop.f32.mrb[3].mxu0  ;;  %v919_v31 = vadd.f32 %v1464_v22, %v918_v27 }
 0x2aa   : > { %v922_v33 = vsel %vm510_vm2, %v919_v31, -inf }
 0x2af   : > { %v1089_v29 = vpop.f32.mrb[4].mxu0 }
 0x2b0   : > { %v1556_v30 = vpop.f32.mrb[5].mxu0  ;;  %v1090_v32 = vadd.f32 %v1464_v22, %v1089_v29  ;;  %v1186_v29 = vld [vmem:[#allocation2] sm:$0xff] }
 0x2b2   : > { %v1093_v34 = vsel %vm510_vm2, %v1090_v32, -inf }
 0x2b4   : > { %757 = vrot.lane.b32.xlu0 %v2166_v12, %s1895_s15  ;;  %s399_s15 = scalar_lea.vmem [#allocation11], %s1458_s23  ;;  %s1795_s23 = sshll.u32 %s1901_s30, 4  ;;  %s1796_s23 = int_to_ptr.vmem [resolvable:$false] %s1795_s23 }
 0x2b5   : > { %s1797_s26 = scalar_lea.vmem %s1796_s23, 256 }
 0x2d3   : > { %923 = vmax.xlane.f32.xlu0 %v922_v33  ;;  %v1478_v33 = vld [vmem:[%s2303_s5] ss:$0 sm:$0xff] }
 0x2d7   : > { %1094 = vmax.xlane.f32.xlu0 %v1093_v34 }
 0x2ed   : > { %1099 = vrot.lane.b32.xlu0 %v2166_v12, %s1896_s17  ;;  %s1326_s17 = sshll.u32 %s399_s15, 4  ;;  %s2250_s17 = int_to_ptr.vmem [resolvable:$true] %s1326_s17 }
 0x2ee   : > { %s1791_s14 = scalar_lea.vmem %s2250_s17, 128  ;;  %p1798_p5 = scmp.lt.s32.totalorder %s2250_s17, %s1796_s23 }
 0x2ef   : > { %p1792_p12 = scmp.ne.s32.totalorder %s2250_s17, %s1791_s14  ;;  %p1799_p9 = scmp.lt.s32.totalorder %s1797_s26, %s1791_s14 }
 0x2f1   : > { %p1793_p10 = pnand %p1792_p12, %p2328_p1  ;;  %p1800_p11 = por %p1799_p9, %p1798_p5 }
 0x2f3   : > { %p1794_p3 = pneg %p1793_p10 }
 0x2f5   : > { %p1801_p0 = pnand %p1800_p11, %p1794_p3 }
 0x32b   : > { %v587_v35 = vpop.xlane.xlu0 %586 }
 0x32c   : > { %v588_v36 = vsub.f32 %v582_v24, %v587_v35 }
 0x32e   : > { %v589_v37 = vmul.f32 1.442695, %v588_v36 }
 0x32f   : > { %v758_v39 = vpop.permute.xlu0 %757 }
 0x330   : > { %1687 = vpow2.f32 %v589_v37 }
 0x33a   : > { %v1688_v38 = vpop.eup %1687 }
 0x33b   : > { %1530 = vmatmul.mubr.msk.f32.vlgmr.msra.gmra.mrb[2].mxu1 %vm510_vm2, %v1688_v38  ;;  %v667_v63 = vsel %vm510_vm2, %v1688_v38, 0.0 }
 0x33c   : > { %1533 = vmatpush3.xpose.msk.msra.mxu1 %vm510_vm2, %v676_v16  ;;  %1534 = vmatprep.mubr.msk.f32.mxu1 %vm1885_vm1, %v1886_v1 }
 0x33d   : > { %1537 = vmatprep.subr.mxu1 %v1886_v1 }
 0x33f   : > { %1535 = vmatmul.mubr.msk.f32.vlgmr.msra.gmra.mrb[4].mxu1 %vm510_vm2, %v674_v17 }
 0x340   : > { %1538 = vmatpush3.msra.mxu1 %v758_v39  ;;  %1539 = vmatprep.mubr.msk.f32.mxu1 %vm1885_vm1, %v1886_v1 }
 0x341   : > { %1547 = vmatprep.subr.mxu1 %v1886_v1 }
 0x360   : > { %v924_v46 = vpop.xlane.xlu0 %923 }
 0x361   : > { %v925_v47 = vsub.f32 %v919_v31, %v924_v46 }
 0x363   : > { %v926_v48 = vmul.f32 1.442695, %v925_v47 }
 0x364   : > { %v1095_v51 = vpop.xlane.xlu0 %1094 }
 0x365   : > { %1689 = vpow2.f32 %v926_v48  ;;  %v1096_v52 = vsub.f32 %v1090_v32, %v1095_v51  ;;  %v1480_v48 = vld [vmem:[%s2305_s7] ss:$0 sm:$0xff] }
 0x367   : > { %v1097_v55 = vmul.f32 1.442695, %v1096_v52 }
 0x368   : > { %v1100_v61 = vpop.permute.xlu0 %1099 }
 0x36f   : > { %v1690_v49 = vpop.eup %1689 }
 0x370   : > { %v1004_v50 = vsel %vm510_vm2, %v1690_v49, 0.0 }
 0x40e   : > { %v663_v40 = vpop.f32.mrb[2].mxu1 }
 0x40f   : > { %v1531_v41 = vpop.f32.mrb[3].mxu1 }
 0x412   : > { %v747_v42 = vpop.f32.mrb[4].mxu1 }
 0x413   : > { %v748_v43 = vadd.f32 %v1464_v22, %v747_v42  ;;  %v1536_v44 = vpop.f32.mrb[5].mxu1 }
 0x415   : > { %v751_v45 = vsel %vm510_vm2, %v748_v43, -inf }
 0x416   : > { %752 = vmax.xlane.f32.xlu1 %v751_v45 }
 0x427   : > { %928 = vrot.lane.b32.xlu1 %v2166_v12, %s1897_s21  ;;  %v1191_v12 = vld [vmem:[#allocation10 + $0x18] sm:$0xff] }
 0x428   : > { %v1583_v15 = vpack.c.bf16 %v1191_v12, %v1190_v11 }
 0x44b   : > { %1005 = vadd.xlane.f32.xlu1 %v1004_v50 }
 0x4a3   : > { %v753_v53 = vpop.xlane.xlu1 %752 }
 0x4a4   : > { %v754_v54 = vsub.f32 %v748_v43, %v753_v53 }
 0x4a6   : > { %v755_v56 = vmul.f32 1.442695, %v754_v54 }
 0x4a7   : > { %v929_v58 = vpop.permute.xlu1 %928 }
 0x4a8   : > { %1691 = vpow2.f32 %v755_v56 }
 0x4a9   : > { %1693 = vpow2.f32 %v1097_v55 }
 0x4b2   : > { %v1692_v57 = vpop.eup %1691 }
 0x4b3   : > { %1540 = vmatmul.mubr.msk.f32.vlgmr.msra.gmra.mrb[6].mxu1 %vm510_vm2, %v1692_v57  ;;  %v833_v59 = vsel %vm510_vm2, %v1692_v57, 0.0  ;;  %v1694_v60 = vpop.eup %1693 }
 0x4b4   : > { %1548 = vmatpush3.msra.mxu1 %v929_v58  ;;  %834 = vadd.xlane.f32.xlu0 %v833_v59  ;;  %v1175_v62 = vsel %vm510_vm2, %v1694_v60, 0.0 }
 0x4b5   : > { %1549 = vmatprep.mubr.msk.f32.mxu1 %vm1885_vm1, %v1886_v1  ;;  %1557 = vmatprep.subr.mxu1 %v1886_v1 }
 0x4b7   : > { %1550 = vmatmul.mubr.msk.f32.vlgmr.msra.gmra.mrb[8].mxu1 %vm510_vm2, %v1690_v49 }
 0x4b8   : > { %1558 = vmatpush3.msra.mxu1 %v1100_v61  ;;  %1176 = vadd.xlane.f32.xlu0 %v1175_v62 }
 0x4b9   : > { %1559 = vmatprep.mubr.msk.f32.mxu1 %vm1885_vm1, %v1886_v1  ;;  %v1580_v1 = vpack.c.bf16 %v1189_v10, %v1188_v9 }
 0x4bb   : > { %1560 = vmatmul.mubr.msk.f32.vlgmr.msra.gmra.mrb[10].mxu1 %vm510_vm2, %v1694_v60  ;;  %1581 = vmatpush3.bf16.msra.mxu0 %v1580_v1 }
 0x4bc   : > { %668 = vadd.xlane.f32.xlu0 %v667_v63  ;;  %1582 = vmatprep.subr.bf16.mxu0 %v1884_v0 }
 0x4bf   : > { %1584 = vmatpush3.bf16.msra.mxu0 %v1583_v15 }
 0x4d8   : > { %v1006_v8 = vpop.xlane.xlu1 %1005 }
 0x541   : > { %v835_v2 = vpop.xlane.xlu0 %834 }
 0x545   : > { %v1177_v3 = vpop.xlane.xlu0 %1176 }
 0x549   : > { %v669_v4 = vpop.xlane.xlu0 %668 }
 0x54a   : > { %1695 = vrcp.f32 %v669_v4 }
 0x54b   : > { %1697 = vrcp.f32 %v835_v2 }
 0x54c   : > { %1699 = vrcp.f32 %v1006_v8 }
 0x54d   : > { %1701 = vrcp.f32 %v1177_v3 }
 0x554   : > { %v1696_v5 = vpop.eup %1695 }
 0x555   : > { %v671_v6 = vmul.f32 %v1696_v5, %v663_v40  ;;  %v1698_v13 = vpop.eup %1697 }
 0x556   : > { %v1700_v18 = vpop.eup %1699 }
 0x557   : > { %672 = vst.msk [vmem:[#allocation4] sm:$0xff] %vm510_vm2, %v671_v6  ;;  %v1702_v22 = vpop.eup %1701 }
 0x586   : > { %v829_v14 = vpop.f32.mrb[6].mxu1 }
 0x587   : > { %v837_v16 = vmul.f32 %v1698_v13, %v829_v14  ;;  %v1541_v17 = vpop.f32.mrb[7].mxu1 }
 0x589   : > { %839 = vrot.lane.b32.xlu0 %v837_v16, %s1898_s19 }
 0x58a   : > { %v1000_v19 = vpop.f32.mrb[8].mxu1 }
 0x58b   : > { %v1008_v20 = vmul.f32 %v1700_v18, %v1000_v19  ;;  %v1551_v21 = vpop.f32.mrb[9].mxu1 }
 0x58d   : > { %1010 = vrot.lane.b32.xlu1 %v1008_v20, %s1899_s8  ;;  %s2327_s8 = sld [smem:[#allocation17_spill]] }
 0x58e   : > { %v1171_v23 = vpop.f32.mrb[10].mxu1 }
 0x58f   : > { %v1179_v24 = vmul.f32 %v1702_v22, %v1171_v23  ;;  %v1561_v25 = vpop.f32.mrb[11].mxu1 }
 0x591   : > { %1181 = vrot.lane.b32.xlu0 %v1179_v24, %s1900_s27 }
 0x593   : > { %s2248_s27 = scalar_lea.hbm %s2327_s8, %s1482_s13 }
 0x5fb   : > { %v840_v26 = vpop.permute.xlu0 %839 }
 0x5fc   : > { %843 = vst.msk [vmem:[#allocation4] sm:$0xff] %vm842_vm3, %v840_v26 }
 0x5ff   : > { %v1011_v0 = vpop.permute.xlu1 %1010 }
 0x600   : > { %1014 = vst.msk [vmem:[#allocation4] sm:$0xff] %vm1013_vm4, %v1011_v0 }
 0x603   : > { %v1182_v27 = vpop.permute.xlu0 %1181 }
 0x604   : > { %1185 = vst.msk [vmem:[#allocation4] sm:$0xff] %vm1184_vm5, %v1182_v27 }
 0x60b   : > { %v1187_v28 = vld [vmem:[#allocation4] sm:$0xff] }
 0x60c   : > { %1571 = vmatmul.mubr.msk.f32.vlgmr.msra.gmra.mrb[6].mxu0 %vm411_vm0, %v1187_v28 }
 0x6df   : > { %v1261_v30 = vpop.f32.mrb[6].mxu0 }
 0x6e0   : > { %v1265_v31 = vadd.f32 %v1261_v30, %v1186_v29  ;;  %v1572_v32 = vpop.f32.mrb[7].mxu0 }
 0x6e2   : > { %1266 = vst.msk [vmem:[#allocation2] sm:$0xff] %vm411_vm0, %v1265_v31 }
 0x6e9   : > { %v1270_v34 = vld [vmem:[#allocation2] sm:$0xff] }
 0x6ea   : > { %v1278_v35 = vadd.f32 %v1478_v33, %v1270_v34 }
 0x6ec   : > { %v1280_v36 = vadd.f32 %v1278_v35, %v2154_v7  ;;  %v1479_v7 = vld [vmem:[%s2304_s6] ss:$0 sm:$0xff] }
 0x6ee   : > { %v1283_v37 = vsel %vm411_vm0, %v1280_v36, 0.0 }
 0x6ef   : > { %1284 = vadd.xlane.f32.xlu0 %v1283_v37 }
 0x77c   : > { %v1285_v38 = vpop.xlane.xlu0 %1284 }
 0x77d   : > { %v1287_v39 = vmul.f32 0.03125, %v1285_v38 }
 0x77f   : > { %v1288_v40 = vsub.f32 %v1280_v36, %v1287_v39 }
 0x781   : > { %v1289_v41 = vmul.f32 %v1288_v40, %v1288_v40 }
 0x783   : > { %v1290_v42 = vsel %vm411_vm0, %v1289_v41, 0.0 }
 0x784   : > { %1291 = vadd.xlane.f32.xlu1 %v1290_v42 }
 0x811   : > { %v1292_v43 = vpop.xlane.xlu1 %1291 }
 0x812   : > { %v1293_v44 = vmul.f32 0.03125, %v1292_v43 }
 0x814   : > { %v1294_v45 = vadd.f32 1e-05, %v1293_v44 }
 0x816   : > { %1703 = vrsqrt.f32 %v1294_v45 }
 0x820   : > { %v1704_v46 = vpop.eup %1703 }
 0x821   : > { %v1296_v47 = vmul.f32 %v1704_v46, %v1288_v40 }
 0x823   : > { %v1303_v49 = vmul.f32 %v1479_v7, %v1296_v47 }
 0x825   : > { %v1310_v50 = vadd.f32 %v1480_v48, %v1303_v49 }
 0x827   : > { %1311 = vst.msk [vmem:[%s399_s15] sm:$0xff] %vm411_vm0, %v1310_v50 }
 0x828   : > { %1804 = shalt.err (!%p1801_p0)
}
 0x829   : > { %s1805_s25 = scalar_lea.hbm %s2248_s27, 128  ;;  %s1809_s18 = scalar_lea.hbm %s2327_s8, 256 }
 0x82a   : > { %p1806_p4 = scmp.ne.s32.totalorder %s2248_s27, %s1805_s25  ;;  %p1810_p7 = scmp.lt.u32.totalorder %s2248_s27, %s2327_s8 }
 0x82b   : > { %p1811_p2 = scmp.lt.u32.totalorder %s1809_s18, %s1805_s25  ;;  %p1813_p12 = scmp.lt.u32.totalorder %s1805_s25, %s2248_s27 }
 0x82c   : > { %p1807_p13 = pnand %p1806_p4, %p2328_p1 }
 0x82d   : > { %p1812_p8 = por %p1811_p2, %p1810_p7 }
 0x82e   : > { %p1808_p6 = pneg %p1807_p13 }
 0x82f   : > { %p1814_p10 = por %p1813_p12, %p1812_p8 }
 0x831   : > { %p1815_p3 = pnand %p1814_p10, %p1808_p6 }
 0x833   : > { %1818 = shalt.err (!%p1815_p3)
}
 0x834   : > { %1595 = dma.vmem_to_hbm [thread:$0]  (%p2328_p1), %s2250_s17, 128, %s2248_s27, %s1313_s11  }
 0x835 PF: > { %s2329_s21 = sld [smem:[#allocation15_spill]]  ;;  %s2330_s19 = sld [smem:[#allocation16_spill]] }
 0x836   : > { %p2332_p9 = scmp.ge.s32.totalorder %s1877_s10, 2 }
 0x83b   : > { %s1338_s14 = sand.u32 1, %s2329_s21   ;;  %p2331_p5 = scmp.ne.s32.totalorder %s2330_s19, 0 }
 0x83c   : > { %s1339_s30 = scalar_lea.sflag [#allocation7], %s1338_s14 }
 0x83d   : > { %p1609_p11 = pnand %p2332_p9, %p2331_p5 }
 0x83f   : > { %1852 = dma.done.wait (!%p1609_p11), %s1339_s30, 128  }
 0x840   : > { %1854 = vsyncadd (!%p1609_p11), %s1339_s30, 4294967168  ;;  %s25_s10 = sadd.s32 1, %s1877_s10   ;;  %s2333_s27 = smov %s1861_s28 }
 0x841   : > { %p22_p0 = scmp.ge.s32.totalorder %s25_s10, 4   ;;  %s2334_s28 = smov %s1865_s29 }
 0x842   : > { %s2335_s29 = smov %s2089_s24  ;;  %s2336_s30 = smov %s1873_s9 }
 0x843   : > { %s2337_s9 = smov %s2339_s16  ;;  %24 = sbr.rel (!%p22_p0) target bundleno = 9 (0x9), region = 121 }
 0x84a   :  { %1344 = vsyncpa [#allocation6], 1 }
 0x84b   :  { %1346 = vsyncpa [#allocation6 + $0x1], 1 }
 0x84c   :  { %1347 = vsyncpa [#allocation9], 1 }
 0x84d   :  { %1348 = vsyncpa [#allocation7], 1 }
 0x84e   :  { %1350 = vsyncpa [#allocation7 + $0x1], 1 }

</bundles_post_ra>
